<compile_context>
chip_gen: v7x
topology: tpu7x:2x2x1
jax: 0.10.0
libtpu: 0.0.40
codegen_flags: <defaults>
</compile_context>

<pallas_src>
import math
import functools

import jax
import jax.numpy as jnp
from jax import lax
from jax.experimental import pallas as pl
from jax.experimental.pallas import tpu as pltpu


def _pick_tile(size, cap, quantum=128):
    """Largest multiple of `quantum` that divides `size` and is <= cap; else `size`."""
    best = 0
    t = quantum
    limit = min(size, cap)
    while t <= limit:
        if size % t == 0:
            best = t
        t += quantum
    return best if best > 0 else size
    # TODO(synk): if S is not a multiple of 128 (odd H*W) this falls back to a
    # single full-S tile; a padded/masked path would be needed for huge odd S.


def _qkv_proj_kernel(x_ref, w_in_ref, b_in_ref, q_ref, k_ref, v_ref,
                     *, channels, mxu_dtype):
    """x_ref: (C, ts) tile of the (B, C, S) input -> q/k/v (ts, C) tiles."""
    C = channels
    x_cs = x_ref[...].astype(mxu_dtype)                          # (C, ts)
    w = w_in_ref[...].astype(mxu_dtype)                          # (C, 3C), q-scaled
    # (ts, 3C) = x_cs^T @ W_in^T : contract the channel dim of both operands.
    qkv = lax.dot_general(
        x_cs, w,
        dimension_numbers=(((0,), (0,)), ((), ())),
        preferred_element_type=jnp.float32) + b_in_ref[...]      # (ts, 3C)
    q_ref[...] = qkv[:, 0 * C:1 * C].astype(q_ref.dtype)
    k_ref[...] = qkv[:, 1 * C:2 * C].astype(k_ref.dtype)
    v_ref[...] = qkv[:, 2 * C:3 * C].astype(v_ref.dtype)


def _flash_attn_kernel(q_ref, k_ref, v_ref, xres_ref, w_out_ref, b_out_ref,
                       o_ref, m_sc, l_sc, acc_sc,
                       *, mxu_dtype, kv_resident, tk):
    """Online-softmax attention over kv tiles + fused out_proj/bias/residual."""
    j = pl.program_id(2)

    @pl.when(j == 0)
    def _init():
        m_sc[...] = jnp.full_like(m_sc, -jnp.inf)
        l_sc[...] = jnp.zeros_like(l_sc)
        acc_sc[...] = jnp.zeros_like(acc_sc)

    if kv_resident:
        # Full (S, C) K/V resident in VMEM (constant index_map): slice the
        # current kv tile in-kernel.  Offset is a static multiple of tk.
        start = pl.multiple_of(j * tk, tk)
        k = k_ref[pl.ds(start, tk), :]                           # (tk, C)
        v = v_ref[pl.ds(start, tk), :]                           # (tk, C)
    else:
        k = k_ref[...]                                           # (tk, C)
        v = v_ref[...]                                           # (tk, C)

    q = q_ref[...].astype(mxu_dtype)                             # (tq, C), pre-scaled
    # s = q @ k^T without materializing a transpose: contract last dims.
    s = lax.dot_general(q, k.astype(mxu_dtype),
                        dimension_numbers=(((1,), (1,)), ((), ())),
                        preferred_element_type=jnp.float32)      # (tq, tk)

    m_prev = m_sc[...]
    m_new = jnp.maximum(m_prev, jnp.max(s, axis=-1, keepdims=True))
    alpha = jnp.exp(m_prev - m_new)
    p = jnp.exp(s - m_new)                                       # f32 exp (EUP)
    l_sc[...] = alpha * l_sc[...] + jnp.sum(p, axis=-1, keepdims=True)
    acc_sc[...] = alpha * acc_sc[...] + jnp.dot(
        p.astype(mxu_dtype), v.astype(mxu_dtype),
        preferred_element_type=jnp.float32)
    m_sc[...] = m_new

    @pl.when(j == pl.num_programs(2) - 1)
    def _finalize():
        # Exact reciprocal: runs once per q tile, essentially free.
        out = acc_sc[...] * pl.reciprocal(l_sc[...], approx=False)   # (tq, C)
        # y^T = W_out @ out^T : produces the output directly in (C, tq)
        # layout (lane-dense along tq), no explicit transpose anywhere.
        y_cs = lax.dot_general(w_out_ref[...].astype(mxu_dtype),
                               out.astype(mxu_dtype),
                               dimension_numbers=(((1,), (1,)), ((), ())),
                               preferred_element_type=jnp.float32)   # (C, tq)
        o_ref[...] = (y_cs + b_out_ref[...] + xres_ref[...]).astype(o_ref.dtype)


def vae_attention_block(x_nchw, w_in, b_in, w_out, b_out, *,
                        tq_cap=512, tk_cap=512, ts_cap=1024,
                        use_bf16_mxu=True, kv_resident=None,
                        vmem_limit_bytes=48 * 1024 * 1024):
    """x_nchw: (B, C, H, W) float32.  Weights in PyTorch nn.Linear convention:
       w_in (3C, C), b_in (3C,), w_out (C, C), b_out (C,)."""
    B, C, H, W = x_nchw.shape
    S = H * W
    out_dtype = x_nchw.dtype
    # bf16 MXU inputs (the big lever on all generations); f32 accumulation.
    mxu_dtype = jnp.bfloat16 if use_bf16_mxu else jnp.float32
    qkv_dtype = jnp.bfloat16 if use_bf16_mxu else jnp.float32
    kv_elem = 2 if use_bf16_mxu else 4

    # (B, C, S) view of the NCHW input -- a free reshape, no transpose, no DMA.
    x_cs = x_nchw.reshape(B, C, S)

    # Fold the 1/sqrt(d_head) attention scale into the q columns of in_proj.
    scale = 1.0 / math.sqrt(C)
    col_scale = jnp.concatenate(
        [jnp.full((C,), scale, dtype=jnp.float32),
         jnp.ones((2 * C,), dtype=jnp.float32)])
    w_in_t = (w_in.astype(jnp.float32) * col_scale[:, None]).T      # (C, 3C)
    b_in_s = (b_in.astype(jnp.float32) * col_scale).reshape(1, 3 * C)
    w_out_f = w_out.astype(jnp.float32)                             # (C, C)
    b_out_c = b_out.astype(jnp.float32).reshape(C, 1)               # (C, 1)

    # Tile sizes: multiples of 128 that divide S (fallback: S itself), so every
    # block obeys the (8,128) rule and (C, t) output blocks are lane-dense.
    ts = _pick_tile(S, ts_cap)
    tq = _pick_tile(S, tq_cap)
    tk = _pick_tile(S, tk_cap)
    nq, nk = S // tq, S // tk

    # K/V residency: keep full (S, C) K and V in VMEM per batch (constant
    # index_map) when the double-buffered footprint fits a conservative budget
    # (safe on v5e/v6e 128 MiB VMEM, and on v7x's 64 MiB thanks to bf16).
    if kv_resident is None:
        kv_resident = (2 * 2 * S * C * kv_elem) <= 24 * 1024 * 1024

    # ---------------- kernel 1: tiled QKV projection ----------------
    qkv_flops = 2 * B * S * C * (3 * C)
    qkv_bytes = B * S * C * 4 + 3 * B * S * C * kv_elem + (3 * C * C + 3 * C) * 4
    q, k, v = pl.pallas_call(
        functools.partial(_qkv_proj_kernel, channels=C, mxu_dtype=mxu_dtype),
        out_shape=(jax.ShapeDtypeStruct((B, S, C), qkv_dtype),
                   jax.ShapeDtypeStruct((B, S, C), qkv_dtype),
                   jax.ShapeDtypeStruct((B, S, C), qkv_dtype)),
        grid_spec=pltpu.PrefetchScalarGridSpec(
            num_scalar_prefetch=0,
            grid=(B, S // ts),
            in_specs=[
                pl.BlockSpec((None, C, ts), lambda b, i: (b, 0, i)),   # x (C, ts)
                # constant index_map -> loaded once, stays resident
                pl.BlockSpec((C, 3 * C), lambda b, i: (0, 0)),         # W_in^T (scaled)
                pl.BlockSpec((1, 3 * C), lambda b, i: (0, 0)),         # b_in (scaled)
            ],
            out_specs=[
                pl.BlockSpec((None, ts, C), lambda b, i: (b, i, 0)),
                pl.BlockSpec((None, ts, C), lambda b, i: (b, i, 0)),
                pl.BlockSpec((None, ts, C), lambda b, i: (b, i, 0)),
            ],
        ),
        compiler_params=pltpu.CompilerParams(
            dimension_semantics=("parallel", "parallel"),
            vmem_limit_bytes=vmem_limit_bytes),
        cost_estimate=pl.CostEstimate(
            flops=qkv_flops, transcendentals=0, bytes_accessed=qkv_bytes),
    )(x_cs, w_in_t, b_in_s)

    # ------- kernel 2: flash attention + out_proj + bias + residual -------
    if kv_resident:
        k_spec = pl.BlockSpec((None, S, C), lambda b, i, j: (b, 0, 0))
        v_spec = pl.BlockSpec((None, S, C), lambda b, i, j: (b, 0, 0))
        kv_read_bytes = 2 * B * S * C * kv_elem              # read once per batch
    else:
        k_spec = pl.BlockSpec((None, tk, C), lambda b, i, j: (b, j, 0))
        v_spec = pl.BlockSpec((None, tk, C), lambda b, i, j: (b, j, 0))
        kv_read_bytes = 2 * nq * B * S * C * kv_elem          # re-read per q tile

    attn_flops = 4 * B * S * S * C + 2 * B * S * C * C
    attn_bytes = (B * S * C * kv_elem        # q
                  + kv_read_bytes            # k, v
                  + B * S * C * 4            # residual
                  + B * S * C * 4            # output
                  + (C * C + C) * 4)
    out_cs = pl.pallas_call(
        functools.partial(_flash_attn_kernel, mxu_dtype=mxu_dtype,
                          kv_resident=kv_resident, tk=tk),
        out_shape=jax.ShapeDtypeStruct((B, C, S), out_dtype),
        grid_spec=pltpu.PrefetchScalarGridSpec(
            num_scalar_prefetch=0,
            grid=(B, nq, nk),
            in_specs=[
                pl.BlockSpec((None, tq, C), lambda b, i, j: (b, i, 0)),   # q tile
                k_spec,                                                   # k
                v_spec,                                                   # v
                pl.BlockSpec((None, C, tq), lambda b, i, j: (b, 0, i)),   # residual
                pl.BlockSpec((C, C), lambda b, i, j: (0, 0)),             # W_out
                pl.BlockSpec((C, 1), lambda b, i, j: (0, 0)),             # b_out
            ],
            out_specs=pl.BlockSpec((None, C, tq), lambda b, i, j: (b, 0, i)),
            scratch_shapes=[
                pltpu.VMEM((tq, 1), jnp.float32),      # running max
                pltpu.VMEM((tq, 1), jnp.float32),      # running denominator
                pltpu.VMEM((tq, C), jnp.float32),      # output accumulator
            ],
        ),
        compiler_params=pltpu.CompilerParams(
            dimension_semantics=("parallel", "parallel", "arbitrary"),
            vmem_limit_bytes=vmem_limit_bytes),
        cost_estimate=pl.CostEstimate(
            flops=attn_flops, transcendentals=B * S * S,
            bytes_accessed=attn_bytes),
    )(q, k, v, x_cs, w_out_f, b_out_c)

    # (B, C, S) -> NCHW is a free reshape.
    return out_cs.reshape(B, C, H, W)


def _reference(x_nchw, w_in, b_in, w_out, b_out):
    """Pure-JAX reference matching the PyTorch forward exactly (f32)."""
    B, C, H, W = x_nchw.shape
    S = H * W
    residual = x_nchw
    x = jnp.transpose(x_nchw.reshape(B, C, S), (0, 2, 1))       # (B, S, C)
    qkv = x @ w_in.T + b_in
    q, k, v = jnp.split(qkv, 3, axis=-1)
    scores = (q @ jnp.swapaxes(k, -1, -2)) / math.sqrt(C)
    attn = jax.nn.softmax(scores, axis=-1)
    out = attn @ v
    out = out @ w_out.T + b_out
    out = jnp.transpose(out, (0, 2, 1)).reshape(B, C, H, W)
    return out + residual


if __name__ == "__main__":
    B, C, H, W = 2, 64, 16, 16          # channels multiple of 32 (GroupNorm(32, C))

    key = jax.random.PRNGKey(0)
    kx, k1, k2, k3, k4 = jax.random.split(key, 5)

    x = jax.random.normal(kx, (B, C, H, W), dtype=jnp.float32)

    # SelfAttention(1, C) parameters (deterministic synthetic init)
    w_in = jax.random.normal(k1, (3 * C, C), dtype=jnp.float32) * 0.05
    b_in = jax.random.normal(k2, (3 * C,), dtype=jnp.float32) * 0.05
    w_out = jax.random.normal(k3, (C, C), dtype=jnp.float32) * 0.05
    b_out = jax.random.normal(k4, (C,), dtype=jnp.float32) * 0.05

    # GroupNorm(32, C) params exist in __init__ but are unused by forward().
    gn_weight = jnp.ones((C,), dtype=jnp.float32)   # noqa: F841
    gn_bias = jnp.zeros((C,), dtype=jnp.float32)    # noqa: F841
    # TODO(synk): groupnorm intentionally not applied, matching the reference forward().

    ref = _reference(x, w_in, b_in, w_out, b_out)

    # A) default config: bf16 MXU + bf16 q/k/v + resident K/V (single tile here).
    out_a = jax.block_until_ready(
        vae_attention_block(x, w_in, b_in, w_out, b_out))
    assert out_a.shape == (B, C, H, W)
    assert jnp.allclose(out_a, ref, atol=1e-2, rtol=1e-2), (
        "bf16/resident: max |diff| = %f" % float(jnp.max(jnp.abs(out_a - ref))))

    # B) f32 MXU, tiled (non-resident) K/V, multi-tile online softmax path.
    out_b = jax.block_until_ready(
        vae_attention_block(x, w_in, b_in, w_out, b_out,
                            use_bf16_mxu=False, kv_resident=False,
                            tq_cap=128, tk_cap=128, ts_cap=128))
    assert jnp.allclose(out_b, ref, atol=1e-3, rtol=1e-3), (
        "f32/tiled: max |diff| = %f" % float(jnp.max(jnp.abs(out_b - ref))))

    # C) bf16 MXU, resident K/V with in-kernel pl.ds kv-tile slicing (nk > 1).
    out_c = jax.block_until_ready(
        vae_attention_block(x, w_in, b_in, w_out, b_out,
                            use_bf16_mxu=True, kv_resident=True,
                            tq_cap=128, tk_cap=128))
    assert jnp.allclose(out_c, ref, atol=1e-2, rtol=1e-2), (
        "bf16/resident-sliced: max |diff| = %f" % float(jnp.max(jnp.abs(out_c - ref))))

    print("KERNEL_OK")
</pallas_src>

<mosaic_0001>
module attributes {stable_mosaic.version = 11 : i64} {
  func.func @_qkv_proj_kernel(%arg0: i32, %arg1: i32, %arg2: memref<1x64x256xf32, #tpu.memory_space<vmem>>, %arg3: memref<64x192xf32, #tpu.memory_space<vmem>>, %arg4: memref<1x192xf32, #tpu.memory_space<vmem>>, %arg5: memref<1x256x64xbf16, #tpu.memory_space<vmem>>, %arg6: memref<1x256x64xbf16, #tpu.memory_space<vmem>>, %arg7: memref<1x256x64xbf16, #tpu.memory_space<vmem>>) attributes {dimension_semantics = [#tpu.dimension_semantics<parallel>, #tpu.dimension_semantics<parallel>], iteration_bounds = array<i64: 2, 1>, scalar_prefetch = 0 : i64, scratch_operands = 0 : i64, tpu.core_type = #tpu.core_type<tc>, window_params = [{transform_indices = @transform_0, window_bounds = array<i64: 1, 64, 256>}, {pipeline_mode = #tpu.pipeline_mode<synchronous>, transform_indices = @transform_1, window_bounds = array<i64: 64, 192>}, {pipeline_mode = #tpu.pipeline_mode<synchronous>, transform_indices = @transform_2, window_bounds = array<i64: 1, 192>}, {transform_indices = @transform_3, window_bounds = array<i64: 1, 256, 64>}, {transform_indices = @transform_4, window_bounds = array<i64: 1, 256, 64>}, {transform_indices = @transform_5, window_bounds = array<i64: 1, 256, 64>}]} {
    %c0 = arith.constant 0 : index
    %c0_0 = arith.constant 0 : index
    %c0_1 = arith.constant 0 : index
    %0 = vector.load %arg2[%c0, %c0_0, %c0_1] : memref<1x64x256xf32, #tpu.memory_space<vmem>>, vector<1x64x256xf32>
    %1 = vector.shape_cast %0 : vector<1x64x256xf32> to vector<64x256xf32>
    %2 = arith.truncf %1 : vector<64x256xf32> to vector<64x256xbf16>
    %c0_2 = arith.constant 0 : index
    %c0_3 = arith.constant 0 : index
    %3 = vector.load %arg3[%c0_2, %c0_3] : memref<64x192xf32, #tpu.memory_space<vmem>>, vector<64x192xf32>
    %4 = arith.truncf %3 : vector<64x192xf32> to vector<64x192xbf16>
    %cst = arith.constant dense<0.000000e+00> : vector<256x192xf32>
    %5 = tpu.matmul %2, %4, %cst {dimension_numbers = #tpu.dot_dimension_numbers<[0], [0], [1], [1], [0, 1, 1, 1], [], []>} : vector<64x256xbf16>, vector<64x192xbf16>, vector<256x192xf32> -> vector<256x192xf32>
    %c0_4 = arith.constant 0 : index
    %c0_5 = arith.constant 0 : index
    %6 = vector.load %arg4[%c0_4, %c0_5] : memref<1x192xf32, #tpu.memory_space<vmem>>, vector<1x192xf32>
    %7 = vector.broadcast %6 : vector<1x192xf32> to vector<256x192xf32>
    %8 = arith.addf %5, %7 : vector<256x192xf32>
    %9 = vector.extract_strided_slice %8 {offsets = [0, 0], sizes = [256, 64], strides = [1, 1]} : vector<256x192xf32> to vector<256x64xf32>
    %10 = arith.truncf %9 : vector<256x64xf32> to vector<256x64xbf16>
    %c0_6 = arith.constant 0 : index
    %c0_7 = arith.constant 0 : index
    %c0_8 = arith.constant 0 : index
    %11 = vector.load %arg5[%c0_6, %c0_7, %c0_8] : memref<1x256x64xbf16, #tpu.memory_space<vmem>>, vector<1x256x64xbf16>
    %12 = vector.shape_cast %11 : vector<1x256x64xbf16> to vector<256x64xbf16>
    %13 = vector.shape_cast %10 : vector<256x64xbf16> to vector<1x256x64xbf16>
    tpu.vector_store %arg5[%c0_6, %c0_7, %c0_8], %13 {strides = array<i32>} : memref<1x256x64xbf16, #tpu.memory_space<vmem>>, vector<1x256x64xbf16>,
    %14 = vector.extract_strided_slice %8 {offsets = [0, 64], sizes = [256, 64], strides = [1, 1]} : vector<256x192xf32> to vector<256x64xf32>
    %15 = arith.truncf %14 : vector<256x64xf32> to vector<256x64xbf16>
    %c0_9 = arith.constant 0 : index
    %c0_10 = arith.constant 0 : index
    %c0_11 = arith.constant 0 : index
    %16 = vector.load %arg6[%c0_9, %c0_10, %c0_11] : memref<1x256x64xbf16, #tpu.memory_space<vmem>>, vector<1x256x64xbf16>
    %17 = vector.shape_cast %16 : vector<1x256x64xbf16> to vector<256x64xbf16>
    %18 = vector.shape_cast %15 : vector<256x64xbf16> to vector<1x256x64xbf16>
    tpu.vector_store %arg6[%c0_9, %c0_10, %c0_11], %18 {strides = array<i32>} : memref<1x256x64xbf16, #tpu.memory_space<vmem>>, vector<1x256x64xbf16>,
    %19 = vector.extract_strided_slice %8 {offsets = [0, 128], sizes = [256, 64], strides = [1, 1]} : vector<256x192xf32> to vector<256x64xf32>
    %20 = arith.truncf %19 : vector<256x64xf32> to vector<256x64xbf16>
    %c0_12 = arith.constant 0 : index
    %c0_13 = arith.constant 0 : index
    %c0_14 = arith.constant 0 : index
    %21 = vector.load %arg7[%c0_12, %c0_13, %c0_14] : memref<1x256x64xbf16, #tpu.memory_space<vmem>>, vector<1x256x64xbf16>
    %22 = vector.shape_cast %21 : vector<1x256x64xbf16> to vector<256x64xbf16>
    %23 = vector.shape_cast %20 : vector<256x64xbf16> to vector<1x256x64xbf16>
    tpu.vector_store %arg7[%c0_12, %c0_13, %c0_14], %23 {strides = array<i32>} : memref<1x256x64xbf16, #tpu.memory_space<vmem>>, vector<1x256x64xbf16>,
    return
  }
  func.func @transform_0(%arg0: i32, %arg1: i32) -> (i32, i32, i32) {
    %c0_i32 = arith.constant 0 : i32
    %c0_i32_0 = arith.constant 0 : i32
    return %arg0, %c0_i32, %arg1 : i32, i32, i32
  }
  func.func @transform_1(%arg0: i32, %arg1: i32) -> (i32, i32) {
    %c0_i32 = arith.constant 0 : i32
    %c0_i32_0 = arith.constant 0 : i32
    %c0_i32_1 = arith.constant 0 : i32
    return %c0_i32, %c0_i32_0 : i32, i32
  }
  func.func @transform_2(%arg0: i32, %arg1: i32) -> (i32, i32) {
    %c0_i32 = arith.constant 0 : i32
    %c0_i32_0 = arith.constant 0 : i32
    %c0_i32_1 = arith.constant 0 : i32
    return %c0_i32, %c0_i32_0 : i32, i32
  }
  func.func @transform_3(%arg0: i32, %arg1: i32) -> (i32, i32, i32) {
    %c0_i32 = arith.constant 0 : i32
    %c0_i32_0 = arith.constant 0 : i32
    return %arg0, %arg1, %c0_i32 : i32, i32, i32
  }
  func.func @transform_4(%arg0: i32, %arg1: i32) -> (i32, i32, i32) {
    %c0_i32 = arith.constant 0 : i32
    %c0_i32_0 = arith.constant 0 : i32
    return %arg0, %arg1, %c0_i32 : i32, i32, i32
  }
  func.func @transform_5(%arg0: i32, %arg1: i32) -> (i32, i32, i32) {
    %c0_i32 = arith.constant 0 : i32
    %c0_i32_0 = arith.constant 0 : i32
    return %arg0, %arg1, %c0_i32 : i32, i32, i32
  }
}

</mosaic_0001>

<bundles_post_ra>
// kernel: tpu_custom_call.1
= control target key start
LH: loop header
LB: loop body
LE: loop exit
PB: predicated region body
PF: predicated region fallthrough
CT: control target
= control target key end

     0   :  { %11 = vsyncpa [#allocation3], 0  ;;  %s2245_s0 = inlined_call_operand.hbm [shape: f32[2,64,256], index: 0, kind: input, shape index: {}]   ;;  %s2246_s1 = inlined_call_operand.hbm [shape: f32[64,192], index: 1, kind: input, shape index: {}]   ;;  %s2247_s2 = inlined_call_operand.vmem [shape: f32[1,192], index: 2, kind: input, shape index: {}]   ;;  %s2248_s3 = inlined_call_operand.vmem [shape: bf16[2,256,64], index: 3, kind: output, shape index: {0}]   ;;  %s2249_s4 = inlined_call_operand.vmem [shape: bf16[2,256,64], index: 4, kind: output, shape index: {1}]   ;;  %s2250_s5 = inlined_call_operand.vmem [shape: bf16[2,256,64], index: 5, kind: output, shape index: {2}]  }
   0x1   :  { %13 = vsyncpa [#allocation3 + $0x1], 0 }
   0x2   :  { %14 = vsyncpa [#allocation5], 0  ;;  %s1719_s18 = smov 0   ;;  %s1721_s19 = smov 0  }
   0x3   :  { %s1723_s20 = smov 0   ;;  %s1725_s21 = smov 0  }
   0x4   :  { %s1727_s22 = smov 0   ;;  %s1729_s23 = smov 0  }
   0x5 LB: > { %s1324_s24 = sadd.s32 4294967295, %s1681_s23   ;;  %p54_p0 = scmp.ne.s32.totalorder %s1665_s19, %s1661_s18  ;;  %s1681_s23 = sphi %s1729_s23, %s20_s23   ;;  %s1677_s22 = sphi %s1727_s22, %s2267_s22   ;;  %s1673_s21 = sphi %s1725_s21, %s2266_s21   ;;  %s1669_s20 = sphi %s1723_s20, %s2265_s20   ;;  %s1665_s19 = sphi %s1721_s19, %s2264_s19   ;;  %s1661_s18 = sphi %s1719_s18, %s2263_s18  }
   0x6   : > { %p1749_p1 = scmp.eq.s32.totalorder %s1324_s24, 0  ;;  %p1326_p2 = scmp.ge.s32.totalorder %s1681_s23, 1 }
   0x7   : > { %p191_p3 = scmp.lt.s32.totalorder %s1681_s23, 3  ;;  %s1683_s28 = smov [#allocation4]  }
   0x8   : > { %s2255_s25 = scalar_select %p1749_p1, 1, 0 }
   0x9   : > { %p1757_p4 = por %p1749_p1, %p54_p0  ;;  %p1761_p5 = pnand %p1326_p2, %p191_p3 }
   0xa   : > { %s203_s29 = sshll.u32 %s1683_s28, 4  ;;  %s32_s6 = sadd.s32 1, %s1677_s22  ;;  %s204_s29 = int_to_ptr.vmem [resolvable:$true] %s203_s29 }
   0xb   : > { %s2256_s26 = scalar_select %p1757_p4, 1, 0 }
   0xc   : > { %s2257_s27 = scalar_select %p1761_p5, 1, 0 }
   0xd   : > { %p1505_p6 = pneg %p1761_p5  ;;  %s1569_s9 = scalar_lea.hbm %s2246_s1, 2048 }
   0xe   : > { %p1570_p8 = scmp.ne.s32.totalorder %s2246_s1, %s1569_s9  ;;  %p1576_p12 = scmp.lt.u32.totalorder %s1569_s9, %s2246_s1 }
   0xf   : > { %p1769_p7 = pnand %p1505_p6, %p1749_p1 }
  0x11   : > { %p1571_p9 = pneg %p1769_p7 }
  0x13   : > { %p1572_p10 = pnand %p1571_p9, %p1570_p8 }
  0x15   : > { %p1573_p11 = pneg %p1572_p10 }
  0x17   : > { %p1578_p13 = pnand %p1576_p12, %p1573_p11 }
  0x19   : > { %1581 = shalt.err (!%p1578_p13)
}
  0x1a   : > { %s1582_s14 = scalar_lea.vmem %s204_s29, 2048  ;;  %p1590_p6 = scmp.lt.s32.totalorder %s204_s29, %s204_s29 }
  0x1b   : > { %p1583_p0 = scmp.ne.s32.totalorder %s204_s29, %s1582_s14  ;;  %p1591_p1 = scmp.lt.s32.totalorder %s1582_s14, %s1582_s14 }
  0x1d   : > { %p1585_p2 = pnand %p1583_p0, %p1571_p9  ;;  %p1592_p4 = por %p1591_p1, %p1590_p6 }
  0x1f   : > { %p1586_p3 = pneg %p1585_p2 }
  0x21   : > { %p1593_p5 = pnand %p1592_p4, %p1586_p3 }
  0x23   : > { %1596 = shalt.err (!%p1593_p5)
}
  0x24   : > { %s1684_s15 = smov 256   ;;  %s1685_s16 = smov 16  }
  0x25   : > { %1508 = dma.hbm_to_vmem [thread:$0]  (!%p1769_p7), %s2246_s1, 2048, %s204_s29, [#allocation5], %s1684_s15, %s1684_s15, %s1685_s16  }
  0x26   : > { %p34_p1 = scmp.ge.s32.totalorder %s32_s6, 2  ;;  %s41_s24 = sadd.s32 1, %s1669_s20 }
  0x27   : > { %p48_p4 = scmp.ne.s32.totalorder %s1669_s20, %s1665_s19  ;;  %p49_p5 = scmp.eq.s32.totalorder %s1681_s23, 0 }
  0x28   : > { %s2269_s6 = smov (%p34_p1, %s32_s6), 0  ;;  %p1514_p9 = scmp.lt.s32.totalorder %s1681_s23, 2 }
  0x29   : > { %p50_p8 = por %p49_p5, %p48_p4  ;;  %s36_s28 = ssub.s32 %s1677_s22, %s2269_s6 }
  0x2a   : > { %s220_s7 = sand.u32 1, %s1669_s20   ;;  %p39_p10 = scmp.eq.s32.totalorder %s36_s28, 0 }
  0x2b   : > { %s1329_s30 = sshll.u32 %s220_s7, 7  ;;  %s1423_s8 = sshll.u32 %s1677_s22, 11 }
  0x2c   : > { %s1805_s9 = scalar_select %p39_p10, %s1669_s20, %s41_s24  }
  0x2d   : > { %s1810_s29 = scalar_lea.hbm %s2245_s0, %s1423_s8  ;;  %s224_s12 = scalar_lea.vmem [#allocation2], %s1329_s30 }
  0x2e   : > { %s233_s13 = sshll.u32 %s224_s12, 4  ;;  %p1812_p7 = pnand %p1514_p9, %p50_p8  ;;  %s1816_s13 = int_to_ptr.vmem [resolvable:$true] %s233_s13 }
  0x2f   : > { %s1818_s17 = scalar_lea.sflag [#allocation3], %s220_s7  ;;  %s1597_s18 = scalar_lea.hbm %s1810_s29, 2048 }
  0x30   : > { %p1598_p11 = scmp.ne.s32.totalorder %s1810_s29, %s1597_s18  ;;  %p1599_p12 = pneg %p1812_p7 }
  0x31   : > { %s1602_s30 = scalar_lea.hbm %s2245_s0, 4096  ;;  %p1603_p2 = scmp.lt.u32.totalorder %s1810_s29, %s2245_s0 }
  0x32   : > { %p1600_p13 = pnand %p1599_p12, %p1598_p11  ;;  %p1604_p3 = scmp.lt.u32.totalorder %s1602_s30, %s1597_s18 }
  0x33   : > { %p1606_p1 = scmp.lt.u32.totalorder %s1597_s18, %s1810_s29 }
  0x34   : > { %p1601_p0 = pneg %p1600_p13  ;;  %p1605_p6 = por %p1604_p3, %p1603_p2 }
  0x36   : > { %p1607_p4 = por %p1606_p1, %p1605_p6 }
  0x38   : > { %p1608_p5 = pnand %p1607_p4, %p1601_p0 }
  0x3a   : > { %1611 = shalt.err (!%p1608_p5)
}
  0x3b   : > { %s1612_s7 = scalar_lea.vmem %s1816_s13, 2048  ;;  %s1686_s11 = smov [#allocation2]  }
  0x3c   : > { %p1613_p8 = scmp.ne.s32.totalorder %s1816_s13, %s1612_s7  ;;  %s1617_s12 = sshll.u32 %s1686_s11, 4  ;;  %s1618_s12 = int_to_ptr.vmem [resolvable:$false] %s1617_s12 }
  0x3d   : > { %s1619_s24 = scalar_lea.vmem %s1618_s12, 4096  ;;  %p1620_p11 = scmp.lt.s32.totalorder %s1816_s13, %s1618_s12 }
  0x3e   : > { %p1615_p9 = pnand %p1613_p8, %p1599_p12  ;;  %p1621_p13 = scmp.lt.s32.totalorder %s1619_s24, %s1612_s7 }
  0x40   : > { %p1616_p10 = pneg %p1615_p9  ;;  %p1622_p2 = por %p1621_p13, %p1620_p11 }
  0x42   : > { %p1623_p3 = pnand %p1622_p2, %p1616_p10 }
  0x44   : > { %1626 = shalt.err (!%p1623_p3)
}
  0x45   : > { %1512 = dma.hbm_to_vmem [thread:$0]  (!%p1812_p7), %s1810_s29, 2048, %s1816_s13, %s1818_s17, %s1684_s15, %s1684_s15, %s1685_s16  }
  0x46   : > { %p2260_p12 = scmp.ne.s32.totalorder %s2257_s27, 0 }
  0x47   : > { %s247_s18 = sand.u32 (!%p2260_p12), 1, %s1665_s19   ;;  %p2261_p0 = scmp.ne.s32.totalorder (!%p2260_p12), %s2256_s26, 0 }
  0x48   : > { %245 = sbr.rel (%p2260_p12) target bundleno = 587 (0x24b), region = 32  ;;  %s1333_s28 = sshll.u32 (!%p2260_p12), %s247_s18, 7 }
  0x49   : > { %s248_s30 = scalar_lea.sflag (!%p2260_p12), [#allocation3], %s247_s18  ;;  %s1852_s8 = scalar_lea.vmem (!%p2260_p12), [#allocation2], %s1333_s28 }
  0x4f   : > { %1652 = dma.done.wait (%p2261_p0), %s248_s30, 2048  }
  0x50   : > { %1654 = vsyncadd (%p2261_p0), %s248_s30, 4294965248  ;;  %p2262_p6 = scmp.ne.s32.totalorder %s2255_s25, 0 }
  0x52   : > { %1656 = dma.done.wait (%p2262_p6), [#allocation5], 2048  }
  0x53   : > { %1658 = vsyncadd (%p2262_p6), [#allocation5], 4294965248  ;;  %v1687_v0 = vmov 0   ;;  %v336_v1 = vld [vmem:[%s1852_s8] sm:$0xff]  ;;  %v338_v2 = vld [vmem:[%s1852_s8 + $0x10] sm:$0xff]  ;;  %vm428_vm0 = vcmask 523264  }
  0x54   : > { %509 = vmatprep.mubr.bf16.mxu0 %v1687_v0  ;;  %589 = vmatprep.mubr.bf16.mxu1 %v1687_v0  ;;  %v337_v3 = vld [vmem:[%s1852_s8 + $0x8] sm:$0xff]  ;;  %v352_v4 = vpack.c.bf16 %v338_v2, %v336_v1  ;;  %v339_v5 = vld [vmem:[%s1852_s8 + $0x18] sm:$0xff]  ;;  %v340_v6 = vld [vmem:[%s1852_s8 + $0x20] sm:$0xff]  ;;  %v386_v2 = vlaneseq  ;;  %p306_p7 = scmp.lt.s32.totalorder %s1673_s21, 1  ;;  %vm798_vm1 = vcmask 519168   ;;  %s1688_s17 = smov 64  }
  0x55   : > { %v342_v7 = vld [vmem:[%s1852_s8 + $0x30] sm:$0xff]  ;;  %v353_v8 = vpack.c.bf16 %v339_v5, %v337_v3  ;;  %v341_v9 = vld [vmem:[%s1852_s8 + $0x28] sm:$0xff]  ;;  %v343_v10 = vld [vmem:[%s1852_s8 + $0x38] sm:$0xff] }
  0x56   : > { %396 = vxpose.xlu0.c.b16.start [1/4] (short) %v352_v4, 128  ;;  %v354_v11 = vpack.c.bf16 %v342_v7, %v340_v6  ;;  %v355_v12 = vpack.c.bf16 %v343_v10, %v341_v9  ;;  %v344_v13 = vld [vmem:[%s1852_s8 + $0x40] sm:$0xff]  ;;  %v346_v14 = vld [vmem:[%s1852_s8 + $0x50] sm:$0xff]  ;;  %v345_v15 = vld [vmem:[%s1852_s8 + $0x48] sm:$0xff]  ;;  %v387_v3 = vshrl.u32 %v386_v2, 7  ;;  %s2271_s21 = smov (!%p306_p7, %s1673_s21), 1 }
  0x57   : > { %412 = vxpose.xlu1.c.b16.start [1/4] (short) %v353_v8, 128  ;;  %v347_v16 = vld [vmem:[%s1852_s8 + $0x58] sm:$0xff]  ;;  %v361_v17 = vld [vmem:[#allocation4 + $0x8] sm:$0xff]  ;;  %v348_v19 = vld [vmem:[%s1852_s8 + $0x60] sm:$0xff]  ;;  %v356_v24 = vpack.c.bf16 %v346_v14, %v344_v13  ;;  %s1919_s27 = sshll.u32 %s2271_s21, 7 }
  0x58   : > { %v363_v18 = vld [vmem:[#allocation4 + $0x18] sm:$0xff]  ;;  %v360_v21 = vld [vmem:[#allocation4] sm:$0xff]  ;;  %v362_v22 = vld [vmem:[#allocation4 + $0x10] sm:$0xff]  ;;  %v357_v29 = vpack.c.bf16 %v347_v16, %v345_v15  ;;  %v388_v4 = vsub.s32 0, %v387_v3  ;;  %v392_v6 = vsub.s32 1, %v387_v3  ;;  %s1926_s29 = scalar_lea.vmem %s2248_s3, %s1919_s27  ;;  %s1934_s14 = scalar_lea.vmem %s2250_s5, %s1919_s27 }
  0x59   : > { %v377_v20 = vpack.c.bf16 %v363_v18, %v361_v17  ;;  %v365_v23 = vld [vmem:[#allocation4 + $0x28] sm:$0xff]  ;;  %v376_v25 = vpack.c.bf16 %v362_v22, %v360_v21  ;;  %v367_v26 = vld [vmem:[#allocation4 + $0x38] sm:$0xff]  ;;  %v364_v27 = vld [vmem:[#allocation4 + $0x20] sm:$0xff]  ;;  %s2161_s11 = scalar_lea.vmem %s2249_s4, %s1919_s27 }
  0x5a   : > { %397 = vxpose.xlu0.c.b16.cont [2/4] (short) %v354_v11, 128  ;;  %v366_v28 = vld [vmem:[#allocation4 + $0x30] sm:$0xff]  ;;  %v379_v31 = vpack.c.bf16 %v367_v26, %v365_v23  ;;  %v369_v32 = vld [vmem:[#allocation4 + $0x48] sm:$0xff]  ;;  %v371_v33 = vld [vmem:[#allocation4 + $0x58] sm:$0xff] }
  0x5b   : > { %413 = vxpose.xlu1.c.b16.cont [2/4] (short) %v355_v12, 128  ;;  %v350_v30 = vld [vmem:[%s1852_s8 + $0x70] sm:$0xff]  ;;  %477 = vmatprep.subr.bf16.mxu0 %v377_v20  ;;  %v349_v34 = vld [vmem:[%s1852_s8 + $0x68] sm:$0xff]  ;;  %v351_v35 = vld [vmem:[%s1852_s8 + $0x78] sm:$0xff]  ;;  %v378_v36 = vpack.c.bf16 %v366_v28, %v364_v27  ;;  %v381_v37 = vpack.c.bf16 %v371_v33, %v369_v32 }
  0x5c   : > { %1491 = vmatprep.subr.bf16.mxu1 %v377_v20  ;;  %478 = vmatpush1.bf16.msra.mxu0 %v376_v25  ;;  %v368_v38 = vld [vmem:[#allocation4 + $0x40] sm:$0xff]  ;;  %v370_v39 = vld [vmem:[#allocation4 + $0x50] sm:$0xff]  ;;  %v358_v40 = vpack.c.bf16 %v350_v30, %v348_v19  ;;  %v373_v41 = vld [vmem:[#allocation4 + $0x68] sm:$0xff]  ;;  %v359_v43 = vpack.c.bf16 %v351_v35, %v349_v34 }
  0x5d   : > { %1495 = vmatpush1.bf16.msra.mxu1 %v376_v25  ;;  %479 = vmatprep.subr.bf16.mxu0 %v379_v31  ;;  %v375_v42 = vld [vmem:[#allocation4 + $0x78] sm:$0xff]  ;;  %v380_v44 = vpack.c.bf16 %v370_v39, %v368_v38  ;;  %v372_v46 = vld [vmem:[#allocation4 + $0x60] sm:$0xff]  ;;  %v374_v47 = vld [vmem:[#allocation4 + $0x70] sm:$0xff] }
  0x5e   : > { %398 = vxpose.xlu0.c.b16.cont [3/4] (short) %v356_v24, 128  ;;  %1492 = vmatprep.subr.bf16.mxu1 %v379_v31  ;;  %v383_v45 = vpack.c.bf16 %v375_v42, %v373_v41  ;;  %v382_v48 = vpack.c.bf16 %v374_v47, %v372_v46  ;;  %v384_v5 = vld [vmem:[%s2247_s2] sm:$0x3] }
  0x5f   : > { %414 = vxpose.xlu1.c.b16.cont [3/4] (short) %v357_v29, 128  ;;  %v1915_v7 = vrot.slane %v384_v5, %v388_v4  ;;  %v1917_v8 = vrot.slane %v384_v5, %v392_v6 }
  0x60   : > { %480 = vmatpush1.bf16.msra.mxu0 %v378_v36 }
  0x61   : > { %1496 = vmatpush1.bf16.msra.mxu1 %v378_v36  ;;  %481 = vmatprep.subr.bf16.mxu0 %v381_v37 }
  0x62   : > { %399 = vxpose.xlu0.c.b16.end [4/4] (short) %v358_v40, 128  ;;  %1493 = vmatprep.subr.bf16.mxu1 %v381_v37 }
  0x63   : > { %415 = vxpose.xlu1.c.b16.end [4/4] (short) %v359_v43, 128 }
  0x64   : > { %482 = vmatpush1.bf16.msra.mxu0 %v380_v44 }
  0x65   : > { %1497 = vmatpush1.bf16.msra.mxu1 %v380_v44  ;;  %483 = vmatprep.subr.bf16.mxu0 %v383_v45 }
  0x66   : > { %1494 = vmatprep.subr.bf16.mxu1 %v383_v45 }
  0x68   : > { %484 = vmatpush1.bf16.msra.mxu0 %v382_v48 }
  0x69   : > { %1498 = vmatpush1.bf16.msra.mxu1 %v382_v48 }
  0xbc   : > { %v404_v49 = vpop.trf.xlu0 }
  0xbd   : > { %v420_v50 = vpop.trf.xlu1  ;;  %1341 = vmatmul.mubr.msk.bf16.vlgmr.msra.gmra.mrb[0].mxu0 %vm428_vm0, %v404_v49 }
  0xbe   : > { %1349 = vmatmul.mubr.msk.bf16.vlgmr.msra.gmra.mrb[0].mxu1 %vm428_vm0, %v420_v50  ;;  %519 = vmatprep.mubr.bf16.mxu0 %v1687_v0 }
  0xbf   : > { %599 = vmatprep.mubr.bf16.mxu1 %v1687_v0 }
  0xc0   : > { %v405_v51 = vpop.trf.xlu0 }
  0xc1   : > { %v421_v52 = vpop.trf.xlu1 }
  0xc4   : > { %v406_v53 = vpop.trf.xlu0 }
  0xc5   : > { %1342 = vmatmul.mubr.msk.bf16.gmra.mrb[4].mxu0 %vm428_vm0, %v405_v51  ;;  %v422_v54 = vpop.trf.xlu1 }
  0xc6   : > { %1350 = vmatmul.mubr.msk.bf16.gmra.mrb[4].mxu1 %vm428_vm0, %v421_v52  ;;  %529 = vmatprep.mubr.bf16.mxu0 %v1687_v0 }
  0xc7   : > { %609 = vmatprep.mubr.bf16.mxu1 %v1687_v0 }
  0xc8   : > { %v407_v55 = vpop.trf.xlu0 }
  0xc9   : > { %v423_v56 = vpop.trf.xlu1 }
  0xcc   : > { %v408_v57 = vpop.trf.xlu0 }
  0xcd   : > { %1343 = vmatmul.mubr.msk.bf16.gmra.mrb[8].mxu0 %vm428_vm0, %v406_v53  ;;  %v424_v58 = vpop.trf.xlu1 }
  0xce   : > { %1351 = vmatmul.mubr.msk.bf16.gmra.mrb[8].mxu1 %vm428_vm0, %v422_v54  ;;  %539 = vmatprep.mubr.bf16.mxu0 %v1687_v0 }
  0xcf   : > { %619 = vmatprep.mubr.bf16.mxu1 %v1687_v0 }
  0xd0   : > { %v409_v59 = vpop.trf.xlu0 }
  0xd1   : > { %v425_v60 = vpop.trf.xlu1 }
  0xd4   : > { %v410_v61 = vpop.trf.xlu0 }
  0xd5   : > { %1344 = vmatmul.mubr.msk.bf16.gmra.mrb[12].mxu0 %vm428_vm0, %v407_v55  ;;  %v426_v62 = vpop.trf.xlu1 }
  0xd6   : > { %1352 = vmatmul.mubr.msk.bf16.gmra.mrb[12].mxu1 %vm428_vm0, %v423_v56  ;;  %549 = vmatprep.mubr.bf16.mxu0 %v1687_v0 }
  0xd7   : > { %629 = vmatprep.mubr.bf16.mxu1 %v1687_v0 }
  0xd8   : > { %v411_v63 = vpop.trf.xlu0 }
  0xd9   : > { %v427_v1 = vpop.trf.xlu1 }
  0xdd   : > { %1345 = vmatmul.mubr.msk.bf16.gmra.mrb[16].mxu0 %vm428_vm0, %v408_v57 }
  0xde   : > { %1353 = vmatmul.mubr.msk.bf16.gmra.mrb[16].mxu1 %vm428_vm0, %v424_v58  ;;  %559 = vmatprep.mubr.bf16.mxu0 %v1687_v0 }
  0xdf   : > { %639 = vmatprep.mubr.bf16.mxu1 %v1687_v0 }
  0xe5   : > { %1346 = vmatmul.mubr.msk.bf16.gmra.mrb[20].mxu0 %vm428_vm0, %v409_v59 }
  0xe6   : > { %1354 = vmatmul.mubr.msk.bf16.gmra.mrb[20].mxu1 %vm428_vm0, %v425_v60  ;;  %569 = vmatprep.mubr.bf16.mxu0 %v1687_v0 }
  0xe7   : > { %649 = vmatprep.mubr.bf16.mxu1 %v1687_v0 }
  0xed   : > { %1347 = vmatmul.mubr.msk.bf16.gmra.mrb[24].mxu0 %vm428_vm0, %v410_v61 }
  0xee   : > { %1355 = vmatmul.mubr.msk.bf16.gmra.mrb[24].mxu1 %vm428_vm0, %v426_v62  ;;  %579 = vmatprep.mubr.bf16.mxu0 %v1687_v0 }
  0xef   : > { %659 = vmatprep.mubr.bf16.mxu1 %v1687_v0 }
  0xf5   : > { %1348 = vmatmul.mubr.msk.bf16.gmra.mrb[28].mxu0 %vm428_vm0, %v411_v63 }
  0xf6   : > { %1356 = vmatmul.mubr.msk.bf16.gmra.mrb[28].mxu1 %vm428_vm0, %v427_v1 }
 0x190   : > { %v511_v0 = vpop.f32.mrb[0].mxu0 }
 0x191   : > { %v512_v9 = vadd.f32 %v511_v0, %v1915_v7  ;;  %v513_v10 = vpop.f32.mrb[1].mxu0  ;;  %v591_v11 = vpop.f32.mrb[0].mxu1 }
 0x192   : > { %v514_v12 = vadd.f32 %v513_v10, %v1917_v8  ;;  %v592_v13 = vadd.f32 %v591_v11, %v1915_v7  ;;  %v515_v14 = vpop.f32.mrb[2].mxu0  ;;  %v593_v15 = vpop.f32.mrb[1].mxu1 }
 0x193   : > { %v1427_v16 = vpack.c.bf16 %v512_v9, %v512_v9  ;;  %v516_v17 = vadd.f32 %v515_v14, %v1915_v7  ;;  %v594_v18 = vadd.f32 %v593_v15, %v1917_v8  ;;  %v517_v19 = vpop.f32.mrb[3].mxu0  ;;  %v595_v20 = vpop.f32.mrb[2].mxu1 }
 0x194   : > { %v1459_v21 = vpack.c.bf16 %v514_v12, %v514_v12  ;;  %v1443_v22 = vpack.c.bf16 %v592_v13, %v592_v13  ;;  %v518_v23 = vadd.f32 %v517_v19, %v1917_v8  ;;  %v596_v24 = vadd.f32 %v595_v20, %v1915_v7  ;;  %v597_v25 = vpop.f32.mrb[3].mxu1 }
 0x195   : > { %799 = vst.msk [vmem:[%s1926_s29] sm:$0xf] %vm798_vm1, %v1427_v16  ;;  %v1428_v26 = vpack.c.bf16 %v516_v17, %v516_v17  ;;  %v1475_v27 = vpack.c.bf16 %v594_v18, %v594_v18  ;;  %v598_v28 = vadd.f32 %v597_v25, %v1917_v8  ;;  %831 = vrot.lane.b32.xlu0 %v1427_v16, %s1688_s17 }
 0x196   : > { %1087 = vst.msk [vmem:[%s1934_s14] sm:$0xf] %vm798_vm1, %v1459_v21  ;;  %815 = vst.msk [vmem:[%s1926_s29 + $0x40] sm:$0xf] %vm798_vm1, %v1443_v22  ;;  %v1460_v29 = vpack.c.bf16 %v518_v23, %v518_v23  ;;  %v1444_v30 = vpack.c.bf16 %v596_v24, %v596_v24 }
 0x197   : > { %800 = vst.msk [vmem:[%s1926_s29 + $0x4] sm:$0xf] %vm798_vm1, %v1428_v26  ;;  %1103 = vst.msk [vmem:[%s1934_s14 + $0x40] sm:$0xf] %vm798_vm1, %v1475_v27  ;;  %v1476_v31 = vpack.c.bf16 %v598_v28, %v598_v28  ;;  %833 = vrot.lane.b32.xlu1 %v1428_v26, %s1688_s17 }
 0x198   : > { %1088 = vst.msk [vmem:[%s1934_s14 + $0x4] sm:$0xf] %vm798_vm1, %v1460_v29  ;;  %816 = vst.msk [vmem:[%s1926_s29 + $0x44] sm:$0xf] %vm798_vm1, %v1444_v30  ;;  %v521_v32 = vpop.f32.mrb[4].mxu0 }
 0x199   : > { %1104 = vst.msk [vmem:[%s1934_s14 + $0x44] sm:$0xf] %vm798_vm1, %v1476_v31  ;;  %v522_v33 = vadd.f32 %v521_v32, %v1915_v7  ;;  %863 = vrot.lane.b32.xlu0 %v1443_v22, %s1688_s17  ;;  %v523_v34 = vpop.f32.mrb[5].mxu0  ;;  %v601_v35 = vpop.f32.mrb[4].mxu1 }
 0x19a   : > { %v524_v36 = vadd.f32 %v523_v34, %v1917_v8  ;;  %v525_v37 = vpop.f32.mrb[6].mxu0  ;;  %v602_v38 = vadd.f32 %v601_v35, %v1915_v7  ;;  %v603_v39 = vpop.f32.mrb[5].mxu1 }
 0x19b   : > { %v1429_v40 = vpack.c.bf16 %v522_v33, %v522_v33  ;;  %v526_v41 = vadd.f32 %v525_v37, %v1915_v7  ;;  %865 = vrot.lane.b32.xlu1 %v1444_v30, %s1688_s17  ;;  %v527_v42 = vpop.f32.mrb[7].mxu0  ;;  %v604_v43 = vadd.f32 %v603_v39, %v1917_v8  ;;  %v605_v44 = vpop.f32.mrb[6].mxu1 }
 0x19c   : > { %v1461_v45 = vpack.c.bf16 %v524_v36, %v524_v36  ;;  %v528_v46 = vadd.f32 %v527_v42, %v1917_v8  ;;  %v1445_v47 = vpack.c.bf16 %v602_v38, %v602_v38  ;;  %v606_v48 = vadd.f32 %v605_v44, %v1915_v7  ;;  %v607_v49 = vpop.f32.mrb[7].mxu1 }
 0x19d   : > { %801 = vst.msk [vmem:[%s1926_s29 + $0x8] sm:$0xf] %vm798_vm1, %v1429_v40  ;;  %v1430_v50 = vpack.c.bf16 %v526_v41, %v526_v41  ;;  %v1477_v51 = vpack.c.bf16 %v604_v43, %v604_v43  ;;  %v608_v52 = vadd.f32 %v607_v49, %v1917_v8 }
 0x19e   : > { %1089 = vst.msk [vmem:[%s1934_s14 + $0x8] sm:$0xf] %vm798_vm1, %v1461_v45  ;;  %v1462_v53 = vpack.c.bf16 %v528_v46, %v528_v46  ;;  %817 = vst.msk [vmem:[%s1926_s29 + $0x48] sm:$0xf] %vm798_vm1, %v1445_v47  ;;  %v1446_v54 = vpack.c.bf16 %v606_v48, %v606_v48  ;;  %867 = vrot.lane.b32.xlu0 %v1445_v47, %s1688_s17 }
 0x19f   : > { %802 = vst.msk [vmem:[%s1926_s29 + $0xc] sm:$0xf] %vm798_vm1, %v1430_v50  ;;  %1105 = vst.msk [vmem:[%s1934_s14 + $0x48] sm:$0xf] %vm798_vm1, %v1477_v51  ;;  %835 = vrot.lane.b32.xlu1 %v1429_v40, %s1688_s17  ;;  %v1478_v55 = vpack.c.bf16 %v608_v52, %v608_v52 }
 0x1a0   : > { %1090 = vst.msk [vmem:[%s1934_s14 + $0xc] sm:$0xf] %vm798_vm1, %v1462_v53  ;;  %818 = vst.msk [vmem:[%s1926_s29 + $0x4c] sm:$0xf] %vm798_vm1, %v1446_v54  ;;  %v531_v56 = vpop.f32.mrb[8].mxu0 }
 0x1a1   : > { %1106 = vst.msk [vmem:[%s1934_s14 + $0x4c] sm:$0xf] %vm798_vm1, %v1478_v55  ;;  %v532_v57 = vadd.f32 %v531_v56, %v1915_v7  ;;  %v533_v58 = vpop.f32.mrb[9].mxu0  ;;  %v611_v59 = vpop.f32.mrb[8].mxu1 }
 0x1a2   : > { %v534_v60 = vadd.f32 %v533_v58, %v1917_v8  ;;  %v535_v61 = vpop.f32.mrb[10].mxu0  ;;  %v612_v62 = vadd.f32 %v611_v59, %v1915_v7  ;;  %v613_v63 = vpop.f32.mrb[9].mxu1 }
 0x1a3   : > { %v1431_v1 = vpack.c.bf16 %v532_v57, %v532_v57  ;;  %837 = vrot.lane.b32.xlu1 %v1430_v50, %s1688_s17  ;;  %v536_v2 = vadd.f32 %v535_v61, %v1915_v7  ;;  %v537_v3 = vpop.f32.mrb[11].mxu0  ;;  %v614_v4 = vadd.f32 %v613_v63, %v1917_v8  ;;  %v615_v5 = vpop.f32.mrb[10].mxu1 }
 0x1a4   : > { %v1463_v6 = vpack.c.bf16 %v534_v60, %v534_v60  ;;  %v538_v0 = vadd.f32 %v537_v3, %v1917_v8  ;;  %v1447_v9 = vpack.c.bf16 %v612_v62, %v612_v62  ;;  %v616_v10 = vadd.f32 %v615_v5, %v1915_v7  ;;  %v617_v11 = vpop.f32.mrb[11].mxu1 }
 0x1a5   : > { %803 = vst.msk [vmem:[%s1926_s29 + $0x10] sm:$0xf] %vm798_vm1, %v1431_v1  ;;  %v1432_v12 = vpack.c.bf16 %v536_v2, %v536_v2  ;;  %v1479_v13 = vpack.c.bf16 %v614_v4, %v614_v4  ;;  %v618_v14 = vadd.f32 %v617_v11, %v1917_v8  ;;  %839 = vrot.lane.b32.xlu0 %v1431_v1, %s1688_s17 }
 0x1a6   : > { %1091 = vst.msk [vmem:[%s1934_s14 + $0x10] sm:$0xf] %vm798_vm1, %v1463_v6  ;;  %v1464_v15 = vpack.c.bf16 %v538_v0, %v538_v0  ;;  %819 = vst.msk [vmem:[%s1926_s29 + $0x50] sm:$0xf] %vm798_vm1, %v1447_v9  ;;  %v1448_v16 = vpack.c.bf16 %v616_v10, %v616_v10 }
 0x1a7   : > { %804 = vst.msk [vmem:[%s1926_s29 + $0x14] sm:$0xf] %vm798_vm1, %v1432_v12  ;;  %1107 = vst.msk [vmem:[%s1934_s14 + $0x50] sm:$0xf] %vm798_vm1, %v1479_v13  ;;  %869 = vrot.lane.b32.xlu1 %v1446_v54, %s1688_s17  ;;  %v1480_v17 = vpack.c.bf16 %v618_v14, %v618_v14 }
 0x1a8   : > { %1092 = vst.msk [vmem:[%s1934_s14 + $0x14] sm:$0xf] %vm798_vm1, %v1464_v15  ;;  %820 = vst.msk [vmem:[%s1926_s29 + $0x54] sm:$0xf] %vm798_vm1, %v1448_v16  ;;  %v541_v18 = vpop.f32.mrb[12].mxu0 }
 0x1a9   : > { %1108 = vst.msk [vmem:[%s1934_s14 + $0x54] sm:$0xf] %vm798_vm1, %v1480_v17  ;;  %v542_v19 = vadd.f32 %v541_v18, %v1915_v7  ;;  %v543_v20 = vpop.f32.mrb[13].mxu0  ;;  %v621_v21 = vpop.f32.mrb[12].mxu1  ;;  %871 = vrot.lane.b32.xlu0 %v1447_v9, %s1688_s17 }
 0x1aa   : > { %v544_v22 = vadd.f32 %v543_v20, %v1917_v8  ;;  %v545_v23 = vpop.f32.mrb[14].mxu0  ;;  %v622_v24 = vadd.f32 %v621_v21, %v1915_v7  ;;  %v623_v25 = vpop.f32.mrb[13].mxu1 }
 0x1ab   : > { %v1433_v26 = vpack.c.bf16 %v542_v19, %v542_v19  ;;  %841 = vrot.lane.b32.xlu1 %v1432_v12, %s1688_s17  ;;  %v546_v27 = vadd.f32 %v545_v23, %v1915_v7  ;;  %v547_v28 = vpop.f32.mrb[15].mxu0  ;;  %v624_v29 = vadd.f32 %v623_v25, %v1917_v8  ;;  %v625_v30 = vpop.f32.mrb[14].mxu1 }
 0x1ac   : > { %v1465_v31 = vpack.c.bf16 %v544_v22, %v544_v22  ;;  %v548_v32 = vadd.f32 %v547_v28, %v1917_v8  ;;  %v1449_v33 = vpack.c.bf16 %v622_v24, %v622_v24  ;;  %v626_v34 = vadd.f32 %v625_v30, %v1915_v7  ;;  %v627_v35 = vpop.f32.mrb[15].mxu1 }
 0x1ad   : > { %805 = vst.msk [vmem:[%s1926_s29 + $0x18] sm:$0xf] %vm798_vm1, %v1433_v26  ;;  %v1434_v36 = vpack.c.bf16 %v546_v27, %v546_v27  ;;  %v1481_v37 = vpack.c.bf16 %v624_v29, %v624_v29  ;;  %v628_v38 = vadd.f32 %v627_v35, %v1917_v8  ;;  %843 = vrot.lane.b32.xlu0 %v1433_v26, %s1688_s17 }
 0x1ae   : > { %1093 = vst.msk [vmem:[%s1934_s14 + $0x18] sm:$0xf] %vm798_vm1, %v1465_v31  ;;  %v1466_v39 = vpack.c.bf16 %v548_v32, %v548_v32  ;;  %821 = vst.msk [vmem:[%s1926_s29 + $0x58] sm:$0xf] %vm798_vm1, %v1449_v33  ;;  %v1450_v40 = vpack.c.bf16 %v626_v34, %v626_v34 }
 0x1af   : > { %806 = vst.msk [vmem:[%s1926_s29 + $0x1c] sm:$0xf] %vm798_vm1, %v1434_v36  ;;  %1109 = vst.msk [vmem:[%s1934_s14 + $0x58] sm:$0xf] %vm798_vm1, %v1481_v37  ;;  %873 = vrot.lane.b32.xlu1 %v1448_v16, %s1688_s17  ;;  %v1482_v41 = vpack.c.bf16 %v628_v38, %v628_v38 }
 0x1b0   : > { %1094 = vst.msk [vmem:[%s1934_s14 + $0x1c] sm:$0xf] %vm798_vm1, %v1466_v39  ;;  %822 = vst.msk [vmem:[%s1926_s29 + $0x5c] sm:$0xf] %vm798_vm1, %v1450_v40  ;;  %v551_v42 = vpop.f32.mrb[16].mxu0 }
 0x1b1   : > { %1110 = vst.msk [vmem:[%s1934_s14 + $0x5c] sm:$0xf] %vm798_vm1, %v1482_v41  ;;  %v552_v43 = vadd.f32 %v551_v42, %v1915_v7  ;;  %v553_v44 = vpop.f32.mrb[17].mxu0  ;;  %v631_v45 = vpop.f32.mrb[16].mxu1  ;;  %875 = vrot.lane.b32.xlu0 %v1449_v33, %s1688_s17 }
 0x1b2   : > { %v554_v46 = vadd.f32 %v553_v44, %v1917_v8  ;;  %v555_v47 = vpop.f32.mrb[18].mxu0  ;;  %v632_v48 = vadd.f32 %v631_v45, %v1915_v7  ;;  %v633_v49 = vpop.f32.mrb[17].mxu1 }
 0x1b3   : > { %v1435_v50 = vpack.c.bf16 %v552_v43, %v552_v43  ;;  %845 = vrot.lane.b32.xlu1 %v1434_v36, %s1688_s17  ;;  %v556_v51 = vadd.f32 %v555_v47, %v1915_v7  ;;  %v557_v52 = vpop.f32.mrb[19].mxu0  ;;  %v634_v53 = vadd.f32 %v633_v49, %v1917_v8  ;;  %v635_v54 = vpop.f32.mrb[18].mxu1 }
 0x1b4   : > { %v1467_v55 = vpack.c.bf16 %v554_v46, %v554_v46  ;;  %v558_v56 = vadd.f32 %v557_v52, %v1917_v8  ;;  %v1451_v57 = vpack.c.bf16 %v632_v48, %v632_v48  ;;  %v636_v58 = vadd.f32 %v635_v54, %v1915_v7  ;;  %v637_v59 = vpop.f32.mrb[19].mxu1 }
 0x1b5   : > { %807 = vst.msk [vmem:[%s1926_s29 + $0x20] sm:$0xf] %vm798_vm1, %v1435_v50  ;;  %v1436_v60 = vpack.c.bf16 %v556_v51, %v556_v51  ;;  %v1483_v61 = vpack.c.bf16 %v634_v53, %v634_v53  ;;  %v638_v62 = vadd.f32 %v637_v59, %v1917_v8  ;;  %847 = vrot.lane.b32.xlu0 %v1435_v50, %s1688_s17 }
 0x1b6   : > { %1095 = vst.msk [vmem:[%s1934_s14 + $0x20] sm:$0xf] %vm798_vm1, %v1467_v55  ;;  %v1468_v63 = vpack.c.bf16 %v558_v56, %v558_v56  ;;  %823 = vst.msk [vmem:[%s1926_s29 + $0x60] sm:$0xf] %vm798_vm1, %v1451_v57  ;;  %v1452_v1 = vpack.c.bf16 %v636_v58, %v636_v58 }
 0x1b7   : > { %808 = vst.msk [vmem:[%s1926_s29 + $0x24] sm:$0xf] %vm798_vm1, %v1436_v60  ;;  %1111 = vst.msk [vmem:[%s1934_s14 + $0x60] sm:$0xf] %vm798_vm1, %v1483_v61  ;;  %877 = vrot.lane.b32.xlu1 %v1450_v40, %s1688_s17  ;;  %v1484_v2 = vpack.c.bf16 %v638_v62, %v638_v62 }
 0x1b8   : > { %1096 = vst.msk [vmem:[%s1934_s14 + $0x24] sm:$0xf] %vm798_vm1, %v1468_v63  ;;  %824 = vst.msk [vmem:[%s1926_s29 + $0x64] sm:$0xf] %vm798_vm1, %v1452_v1  ;;  %v561_v3 = vpop.f32.mrb[20].mxu0 }
 0x1b9   : > { %1112 = vst.msk [vmem:[%s1934_s14 + $0x64] sm:$0xf] %vm798_vm1, %v1484_v2  ;;  %v562_v4 = vadd.f32 %v561_v3, %v1915_v7  ;;  %v563_v5 = vpop.f32.mrb[21].mxu0  ;;  %v641_v6 = vpop.f32.mrb[20].mxu1  ;;  %879 = vrot.lane.b32.xlu0 %v1451_v57, %s1688_s17 }
 0x1ba   : > { %v564_v0 = vadd.f32 %v563_v5, %v1917_v8  ;;  %v565_v9 = vpop.f32.mrb[22].mxu0  ;;  %v642_v10 = vadd.f32 %v641_v6, %v1915_v7  ;;  %v643_v11 = vpop.f32.mrb[21].mxu1 }
 0x1bb   : > { %v1437_v12 = vpack.c.bf16 %v562_v4, %v562_v4  ;;  %849 = vrot.lane.b32.xlu1 %v1436_v60, %s1688_s17  ;;  %v566_v13 = vadd.f32 %v565_v9, %v1915_v7  ;;  %v567_v14 = vpop.f32.mrb[23].mxu0  ;;  %v644_v15 = vadd.f32 %v643_v11, %v1917_v8  ;;  %v645_v16 = vpop.f32.mrb[22].mxu1 }
 0x1bc   : > { %v1469_v17 = vpack.c.bf16 %v564_v0, %v564_v0  ;;  %v568_v18 = vadd.f32 %v567_v14, %v1917_v8  ;;  %v1453_v19 = vpack.c.bf16 %v642_v10, %v642_v10  ;;  %v646_v20 = vadd.f32 %v645_v16, %v1915_v7  ;;  %v647_v21 = vpop.f32.mrb[23].mxu1 }
 0x1bd   : > { %809 = vst.msk [vmem:[%s1926_s29 + $0x28] sm:$0xf] %vm798_vm1, %v1437_v12  ;;  %v1438_v22 = vpack.c.bf16 %v566_v13, %v566_v13  ;;  %v1485_v23 = vpack.c.bf16 %v644_v15, %v644_v15  ;;  %v648_v24 = vadd.f32 %v647_v21, %v1917_v8  ;;  %851 = vrot.lane.b32.xlu0 %v1437_v12, %s1688_s17 }
 0x1be   : > { %1097 = vst.msk [vmem:[%s1934_s14 + $0x28] sm:$0xf] %vm798_vm1, %v1469_v17  ;;  %v1470_v25 = vpack.c.bf16 %v568_v18, %v568_v18  ;;  %825 = vst.msk [vmem:[%s1926_s29 + $0x68] sm:$0xf] %vm798_vm1, %v1453_v19  ;;  %v1454_v26 = vpack.c.bf16 %v646_v20, %v646_v20 }
 0x1bf   : > { %810 = vst.msk [vmem:[%s1926_s29 + $0x2c] sm:$0xf] %vm798_vm1, %v1438_v22  ;;  %1113 = vst.msk [vmem:[%s1934_s14 + $0x68] sm:$0xf] %vm798_vm1, %v1485_v23  ;;  %881 = vrot.lane.b32.xlu1 %v1452_v1, %s1688_s17  ;;  %v1486_v27 = vpack.c.bf16 %v648_v24, %v648_v24 }
 0x1c0   : > { %1098 = vst.msk [vmem:[%s1934_s14 + $0x2c] sm:$0xf] %vm798_vm1, %v1470_v25  ;;  %826 = vst.msk [vmem:[%s1926_s29 + $0x6c] sm:$0xf] %vm798_vm1, %v1454_v26  ;;  %v571_v28 = vpop.f32.mrb[24].mxu0 }
 0x1c1   : > { %1114 = vst.msk [vmem:[%s1934_s14 + $0x6c] sm:$0xf] %vm798_vm1, %v1486_v27  ;;  %v572_v29 = vadd.f32 %v571_v28, %v1915_v7  ;;  %v573_v30 = vpop.f32.mrb[25].mxu0  ;;  %v651_v31 = vpop.f32.mrb[24].mxu1  ;;  %883 = vrot.lane.b32.xlu0 %v1453_v19, %s1688_s17 }
 0x1c2   : > { %v574_v32 = vadd.f32 %v573_v30, %v1917_v8  ;;  %v575_v33 = vpop.f32.mrb[26].mxu0  ;;  %v652_v34 = vadd.f32 %v651_v31, %v1915_v7  ;;  %v653_v35 = vpop.f32.mrb[25].mxu1 }
 0x1c3   : > { %v1439_v36 = vpack.c.bf16 %v572_v29, %v572_v29  ;;  %853 = vrot.lane.b32.xlu1 %v1438_v22, %s1688_s17  ;;  %v576_v37 = vadd.f32 %v575_v33, %v1915_v7  ;;  %v577_v38 = vpop.f32.mrb[27].mxu0  ;;  %v654_v39 = vadd.f32 %v653_v35, %v1917_v8  ;;  %v655_v40 = vpop.f32.mrb[26].mxu1 }
 0x1c4   : > { %v1471_v41 = vpack.c.bf16 %v574_v32, %v574_v32  ;;  %v578_v42 = vadd.f32 %v577_v38, %v1917_v8  ;;  %v1455_v43 = vpack.c.bf16 %v652_v34, %v652_v34  ;;  %v656_v44 = vadd.f32 %v655_v40, %v1915_v7  ;;  %v657_v45 = vpop.f32.mrb[27].mxu1 }
 0x1c5   : > { %811 = vst.msk [vmem:[%s1926_s29 + $0x30] sm:$0xf] %vm798_vm1, %v1439_v36  ;;  %v1440_v46 = vpack.c.bf16 %v576_v37, %v576_v37  ;;  %v1487_v47 = vpack.c.bf16 %v654_v39, %v654_v39  ;;  %v658_v48 = vadd.f32 %v657_v45, %v1917_v8  ;;  %855 = vrot.lane.b32.xlu0 %v1439_v36, %s1688_s17 }
 0x1c6   : > { %1099 = vst.msk [vmem:[%s1934_s14 + $0x30] sm:$0xf] %vm798_vm1, %v1471_v41  ;;  %v1472_v49 = vpack.c.bf16 %v578_v42, %v578_v42  ;;  %827 = vst.msk [vmem:[%s1926_s29 + $0x70] sm:$0xf] %vm798_vm1, %v1455_v43  ;;  %v1456_v50 = vpack.c.bf16 %v656_v44, %v656_v44 }
 0x1c7   : > { %812 = vst.msk [vmem:[%s1926_s29 + $0x34] sm:$0xf] %vm798_vm1, %v1440_v46  ;;  %1115 = vst.msk [vmem:[%s1934_s14 + $0x70] sm:$0xf] %vm798_vm1, %v1487_v47  ;;  %885 = vrot.lane.b32.xlu1 %v1454_v26, %s1688_s17  ;;  %v1488_v51 = vpack.c.bf16 %v658_v48, %v658_v48 }
 0x1c8   : > { %1100 = vst.msk [vmem:[%s1934_s14 + $0x34] sm:$0xf] %vm798_vm1, %v1472_v49  ;;  %828 = vst.msk [vmem:[%s1926_s29 + $0x74] sm:$0xf] %vm798_vm1, %v1456_v50  ;;  %v581_v52 = vpop.f32.mrb[28].mxu0 }
 0x1c9   : > { %1116 = vst.msk [vmem:[%s1934_s14 + $0x74] sm:$0xf] %vm798_vm1, %v1488_v51  ;;  %v582_v53 = vadd.f32 %v581_v52, %v1915_v7  ;;  %v583_v54 = vpop.f32.mrb[29].mxu0  ;;  %v661_v55 = vpop.f32.mrb[28].mxu1  ;;  %887 = vrot.lane.b32.xlu0 %v1455_v43, %s1688_s17 }
 0x1ca   : > { %v584_v56 = vadd.f32 %v583_v54, %v1917_v8  ;;  %v585_v57 = vpop.f32.mrb[30].mxu0  ;;  %v662_v58 = vadd.f32 %v661_v55, %v1915_v7  ;;  %v663_v59 = vpop.f32.mrb[29].mxu1 }
 0x1cb   : > { %v1441_v60 = vpack.c.bf16 %v582_v53, %v582_v53  ;;  %857 = vrot.lane.b32.xlu1 %v1440_v46, %s1688_s17  ;;  %v586_v61 = vadd.f32 %v585_v57, %v1915_v7  ;;  %v587_v62 = vpop.f32.mrb[31].mxu0  ;;  %v664_v63 = vadd.f32 %v663_v59, %v1917_v8  ;;  %v665_v1 = vpop.f32.mrb[30].mxu1 }
 0x1cc   : > { %v1473_v2 = vpack.c.bf16 %v584_v56, %v584_v56  ;;  %v588_v3 = vadd.f32 %v587_v62, %v1917_v8  ;;  %v1457_v4 = vpack.c.bf16 %v662_v58, %v662_v58  ;;  %v666_v5 = vadd.f32 %v665_v1, %v1915_v7  ;;  %v667_v6 = vpop.f32.mrb[31].mxu1 }
 0x1cd   : > { %813 = vst.msk [vmem:[%s1926_s29 + $0x38] sm:$0xf] %vm798_vm1, %v1441_v60  ;;  %v1442_v0 = vpack.c.bf16 %v586_v61, %v586_v61  ;;  %v1489_v9 = vpack.c.bf16 %v664_v63, %v664_v63  ;;  %v668_v10 = vadd.f32 %v667_v6, %v1917_v8  ;;  %859 = vrot.lane.b32.xlu0 %v1441_v60, %s1688_s17 }
 0x1ce   : > { %1101 = vst.msk [vmem:[%s1934_s14 + $0x38] sm:$0xf] %vm798_vm1, %v1473_v2  ;;  %v1474_v11 = vpack.c.bf16 %v588_v3, %v588_v3  ;;  %829 = vst.msk [vmem:[%s1926_s29 + $0x78] sm:$0xf] %vm798_vm1, %v1457_v4  ;;  %v1458_v12 = vpack.c.bf16 %v666_v5, %v666_v5 }
 0x1cf   : > { %814 = vst.msk [vmem:[%s1926_s29 + $0x3c] sm:$0xf] %vm798_vm1, %v1442_v0  ;;  %1117 = vst.msk [vmem:[%s1934_s14 + $0x78] sm:$0xf] %vm798_vm1, %v1489_v9  ;;  %889 = vrot.lane.b32.xlu1 %v1456_v50, %s1688_s17  ;;  %v1490_v7 = vpack.c.bf16 %v668_v10, %v668_v10 }
 0x1d0   : > { %1102 = vst.msk [vmem:[%s1934_s14 + $0x3c] sm:$0xf] %vm798_vm1, %v1474_v11  ;;  %830 = vst.msk [vmem:[%s1926_s29 + $0x7c] sm:$0xf] %vm798_vm1, %v1458_v12 }
 0x1d1   : > { %1118 = vst.msk [vmem:[%s1934_s14 + $0x7c] sm:$0xf] %vm798_vm1, %v1490_v7  ;;  %891 = vrot.lane.b32.xlu0 %v1457_v4, %s1688_s17 }
 0x1d3   : > { %861 = vrot.lane.b32.xlu1 %v1442_v0, %s1688_s17 }
 0x1d7   : > { %893 = vrot.lane.b32.xlu1 %v1458_v12, %s1688_s17 }
 0x207   : > { %v832_v8 = vpop.permute.xlu0 %831 }
 0x208   : > { %927 = vst.msk [vmem:[%s2161_s11] sm:$0xf] %vm798_vm1, %v832_v8 }
 0x209   : > { %v834_v13 = vpop.permute.xlu1 %833 }
 0x20a   : > { %928 = vst.msk [vmem:[%s2161_s11 + $0x4] sm:$0xf] %vm798_vm1, %v834_v13 }
 0x20b   : > { %v864_v14 = vpop.permute.xlu0 %863 }
 0x20c   : > { %943 = vst.msk [vmem:[%s2161_s11 + $0x40] sm:$0xf] %vm798_vm1, %v864_v14 }
 0x20d   : > { %v866_v15 = vpop.permute.xlu1 %865 }
 0x20e   : > { %944 = vst.msk [vmem:[%s2161_s11 + $0x44] sm:$0xf] %vm798_vm1, %v866_v15 }
 0x210   : > { %v868_v16 = vpop.permute.xlu0 %867 }
 0x211   : > { %v836_v17 = vpop.permute.xlu1 %835  ;;  %945 = vst.msk [vmem:[%s2161_s11 + $0x48] sm:$0xf] %vm798_vm1, %v868_v16 }
 0x212   : > { %929 = vst.msk [vmem:[%s2161_s11 + $0x8] sm:$0xf] %vm798_vm1, %v836_v17 }
 0x215   : > { %v838_v18 = vpop.permute.xlu1 %837 }
 0x216   : > { %930 = vst.msk [vmem:[%s2161_s11 + $0xc] sm:$0xf] %vm798_vm1, %v838_v18 }
 0x217   : > { %v840_v19 = vpop.permute.xlu0 %839 }
 0x218   : > { %931 = vst.msk [vmem:[%s2161_s11 + $0x10] sm:$0xf] %vm798_vm1, %v840_v19 }
 0x219   : > { %v870_v20 = vpop.permute.xlu1 %869 }
 0x21a   : > { %946 = vst.msk [vmem:[%s2161_s11 + $0x4c] sm:$0xf] %vm798_vm1, %v870_v20 }
 0x21b   : > { %v872_v21 = vpop.permute.xlu0 %871 }
 0x21c   : > { %947 = vst.msk [vmem:[%s2161_s11 + $0x50] sm:$0xf] %vm798_vm1, %v872_v21 }
 0x21d   : > { %v842_v22 = vpop.permute.xlu1 %841 }
 0x21e   : > { %932 = vst.msk [vmem:[%s2161_s11 + $0x14] sm:$0xf] %vm798_vm1, %v842_v22 }
 0x21f   : > { %v844_v23 = vpop.permute.xlu0 %843 }
 0x220   : > { %933 = vst.msk [vmem:[%s2161_s11 + $0x18] sm:$0xf] %vm798_vm1, %v844_v23 }
 0x221   : > { %v874_v24 = vpop.permute.xlu1 %873 }
 0x222   : > { %948 = vst.msk [vmem:[%s2161_s11 + $0x54] sm:$0xf] %vm798_vm1, %v874_v24 }
 0x223   : > { %v876_v25 = vpop.permute.xlu0 %875 }
 0x224   : > { %949 = vst.msk [vmem:[%s2161_s11 + $0x58] sm:$0xf] %vm798_vm1, %v876_v25 }
 0x225   : > { %v846_v26 = vpop.permute.xlu1 %845 }
 0x226   : > { %934 = vst.msk [vmem:[%s2161_s11 + $0x1c] sm:$0xf] %vm798_vm1, %v846_v26 }
 0x227   : > { %v848_v27 = vpop.permute.xlu0 %847 }
 0x228   : > { %935 = vst.msk [vmem:[%s2161_s11 + $0x20] sm:$0xf] %vm798_vm1, %v848_v27 }
 0x229   : > { %v878_v28 = vpop.permute.xlu1 %877 }
 0x22a   : > { %950 = vst.msk [vmem:[%s2161_s11 + $0x5c] sm:$0xf] %vm798_vm1, %v878_v28 }
 0x22b   : > { %v880_v29 = vpop.permute.xlu0 %879 }
 0x22c   : > { %951 = vst.msk [vmem:[%s2161_s11 + $0x60] sm:$0xf] %vm798_vm1, %v880_v29 }
 0x22d   : > { %v850_v30 = vpop.permute.xlu1 %849 }
 0x22e   : > { %936 = vst.msk [vmem:[%s2161_s11 + $0x24] sm:$0xf] %vm798_vm1, %v850_v30 }
 0x22f   : > { %v852_v31 = vpop.permute.xlu0 %851 }
 0x230   : > { %937 = vst.msk [vmem:[%s2161_s11 + $0x28] sm:$0xf] %vm798_vm1, %v852_v31 }
 0x231   : > { %v882_v32 = vpop.permute.xlu1 %881 }
 0x232   : > { %952 = vst.msk [vmem:[%s2161_s11 + $0x64] sm:$0xf] %vm798_vm1, %v882_v32 }
 0x233   : > { %v884_v33 = vpop.permute.xlu0 %883 }
 0x234   : > { %953 = vst.msk [vmem:[%s2161_s11 + $0x68] sm:$0xf] %vm798_vm1, %v884_v33 }
 0x235   : > { %v854_v34 = vpop.permute.xlu1 %853 }
 0x236   : > { %938 = vst.msk [vmem:[%s2161_s11 + $0x2c] sm:$0xf] %vm798_vm1, %v854_v34 }
 0x237   : > { %v856_v35 = vpop.permute.xlu0 %855 }
 0x238   : > { %939 = vst.msk [vmem:[%s2161_s11 + $0x30] sm:$0xf] %vm798_vm1, %v856_v35 }
 0x239   : > { %v886_v36 = vpop.permute.xlu1 %885 }
 0x23a   : > { %954 = vst.msk [vmem:[%s2161_s11 + $0x6c] sm:$0xf] %vm798_vm1, %v886_v36 }
 0x23b   : > { %v888_v37 = vpop.permute.xlu0 %887 }
 0x23c   : > { %955 = vst.msk [vmem:[%s2161_s11 + $0x70] sm:$0xf] %vm798_vm1, %v888_v37 }
 0x23d   : > { %v858_v38 = vpop.permute.xlu1 %857 }
 0x23e   : > { %940 = vst.msk [vmem:[%s2161_s11 + $0x34] sm:$0xf] %vm798_vm1, %v858_v38 }
 0x23f   : > { %v860_v39 = vpop.permute.xlu0 %859 }
 0x240   : > { %941 = vst.msk [vmem:[%s2161_s11 + $0x38] sm:$0xf] %vm798_vm1, %v860_v39 }
 0x241   : > { %v890_v40 = vpop.permute.xlu1 %889 }
 0x242   : > { %956 = vst.msk [vmem:[%s2161_s11 + $0x74] sm:$0xf] %vm798_vm1, %v890_v40 }
 0x243   : > { %v892_v41 = vpop.permute.xlu0 %891 }
 0x244   : > { %957 = vst.msk [vmem:[%s2161_s11 + $0x78] sm:$0xf] %vm798_vm1, %v892_v41 }
 0x245   : > { %v862_v42 = vpop.permute.xlu1 %861 }
 0x246   : > { %942 = vst.msk [vmem:[%s2161_s11 + $0x3c] sm:$0xf] %vm798_vm1, %v862_v42 }
 0x249   : > { %v894_v43 = vpop.permute.xlu1 %893 }
 0x24a   : > { %958 = vst.msk [vmem:[%s2161_s11 + $0x7c] sm:$0xf] %vm798_vm1, %v894_v43 }
 0x24b PF: > { %s20_s23 = sadd.s32 1, %s1681_s23   ;;  %s2263_s18 = smov %s1665_s19 }
 0x24c   : > { %p17_p1 = scmp.ge.s32.totalorder %s20_s23, 4   ;;  %s2264_s19 = smov %s1669_s20 }
 0x24d   : > { %s2265_s20 = smov %s1805_s9  ;;  %s2266_s21 = smov %s1677_s22 }
 0x24e   : > { %s2267_s22 = smov %s2269_s6  ;;  %19 = sbr.rel (!%p17_p1) target bundleno = 5 (0x5), region = 100 }
 0x255   :  { %1199 = vsyncpa [#allocation3], 1 }
 0x256   :  { %1201 = vsyncpa [#allocation3 + $0x1], 1 }
 0x257   :  { %1202 = vsyncpa [#allocation5], 1 }

</bundles_post_ra>
